<compile_context>
chip_gen: v6e
topology: v6e:2x2x1
jax: 0.10.0
libtpu: 0.0.40
codegen_flags: <defaults>
</compile_context>

<pallas_src>
import functools

import jax
import jax.numpy as jnp
from jax.experimental import pallas as pl
from jax.experimental.pallas import tpu as pltpu

# ---------------------------------------------------------------------------
# KAT_Group rational-activation coefficients ('gelu' analytic init).
# Numerator order 5 (shared across groups); denominator order 4 (per group).
# ---------------------------------------------------------------------------
GELU_NUM = (-0.0012423594497499122, 0.5080497063245629, 0.41586363182937475,
            0.13022718688035761, 0.024355900098993424, 0.00290283948155535)
GELU_DEN = (-0.06675015696494944, 0.17927646217001553,
            0.03746682605496631, 0.0014671589700599463)
NUM_GROUPS = 8  # KAT_Group default


def _round_up(a, b):
    return (a + b - 1) // b * b


def _device_kind():
    try:
        return jax.devices()[0].device_kind.lower()
    except Exception:
        return ""


def _vmem_capacity_bytes():
    try:
        cap = getattr(pltpu.get_tpu_info(), "vmem_capacity_bytes", None)
        if cap:
            return int(cap)
    except Exception:
        pass
    # v7x has 64 MiB VMEM per TensorCore; v5e / v6e have 128 MiB.
    return 64 * 1024 * 1024 if "7" in _device_kind() else 128 * 1024 * 1024


def _has_bf16_vpu():
    # v6e / v7x VPUs have native bf16 VALU lanes; v5e does not (emulated in f32).
    return "v5" not in _device_kind()


def kan_kernel(x_ref, w1_ref, bd_ref, w2_ref, b2_ref, o_ref, acc_ref,
               *, act_dtype, approx_recip):
    """One (token-tile, hidden-chunk) grid step of the fused KAN block.

    act1 (identity rational) and drop1/drop2 (p=0.0, eval mode) are identities.
    TODO(synk): training-mode dropout (p > 0) and norm_layer are not implemented.
    """
    k = pl.program_id(1)

    # fc1 for this hidden chunk on the MXU (native-dtype operands, f32 acc).
    h = jnp.dot(x_ref[...], w1_ref[...], preferred_element_type=jnp.float32)

    bd = bd_ref[...]                        # (8, th) f32: row0 = b1, rows1..4 = |den|
    h = h + bd[0:1, :]

    # act2: grouped safe rational
    #   P(h) = a0 + a1 h + ... + a5 h^5                 (shared numerator)
    #   Q(h) = 1 + |b0||h| + ... + |b3||h|^4             (per-channel |b|)
    # Evaluated in `act_dtype` (bf16 on v6e/v7x bf16 path -> ~2x VPU throughput).
    hh = h.astype(act_dtype)
    a0, a1, a2, a3, a4, a5 = GELU_NUM
    p = a0 + hh * (a1 + hh * (a2 + hh * (a3 + hh * (a4 + hh * a5))))
    ah = jnp.abs(hh)
    d0 = bd[1:2, :].astype(act_dtype)
    d1 = bd[2:3, :].astype(act_dtype)
    d2 = bd[3:4, :].astype(act_dtype)
    d3 = bd[4:5, :].astype(act_dtype)
    q = 1.0 + ah * (d0 + ah * (d1 + ah * (d2 + ah * d3)))

    # Divide via the EUP reciprocal slot (f32 input for lowering robustness;
    # approx on the bf16 path, exact on the f32 path).
    inv_q = pl.reciprocal(q.astype(jnp.float32), approx=approx_recip)
    act = (p * inv_q).astype(w2_ref.dtype)

    # fc2 partial contribution of this hidden chunk, accumulated in f32.
    partial = jnp.dot(act, w2_ref[...], preferred_element_type=jnp.float32)

    @pl.when(k == 0)
    def _():
        acc_ref[...] = partial

    @pl.when(k != 0)
    def _():
        acc_ref[...] += partial

    @pl.when(k == pl.num_programs(1) - 1)
    def _():
        o_ref[...] = (acc_ref[...] + b2_ref[...]).astype(o_ref.dtype)


def kan_forward(x, w1, b1, w2, b2, dcoef, *, tm=None, act_dtype=None,
                approx_recip=None):
    """x: (B, N, C).  w1: (C, H), b1: (1, H), w2: (H, O), b2: (1, O), dcoef: (4, H).

    Weights are pre-transposed to (in, out) so the kernel does x @ W directly.
    Matmuls run in the input dtype (bf16 stays bf16) with f32 accumulation.
    """
    B, N, C = x.shape
    H = w1.shape[1]
    O = w2.shape[1]
    M = B * N
    itm = jnp.dtype(x.dtype).itemsize

    C_pad = _round_up(C, 128)
    H_pad = _round_up(H, 128)
    O_pad = _round_up(O, 128)

    if act_dtype is None:
        act_dtype = (jnp.bfloat16
                     if (x.dtype == jnp.bfloat16 and _has_bf16_vpu())
                     else jnp.float32)
    if approx_recip is None:
        # Exact reciprocal preserves the tight f32 tolerance; the bf16 output
        # rounding hides the ~1e-3 approx error on the bf16 path.
        approx_recip = (x.dtype == jnp.bfloat16)

    # ---- per-generation VMEM budget & tile geometry --------------------------
    vmem_cap = _vmem_capacity_bytes()
    vmem_limit = max(32 * 1024 * 1024,
                     min(vmem_cap - 12 * 1024 * 1024, 100 * 1024 * 1024))
    budget = int(vmem_limit * 0.9)
    sub = 16                                      # sublane multiple (f32 & bf16)

    # Hidden chunk th: largest divisor of H_pad (multiple of 128) whose resident
    # weight panels still leave room for a decent token tile.
    th = tm_budget = None
    for cand_th in (t for t in range(H_pad, 0, -128) if H_pad % t == 0):
        nk = H_pad // cand_th
        nb_w = 1 if nk == 1 else 2                # grid-invariant -> single buffer
        fixed = (nb_w * (C_pad + O_pad) * cand_th * itm   # w1 / w2 panels
                 + nb_w * 8 * cand_th * 4                 # merged b1 + |den|
                 + 8 * O_pad * 4)                          # fc2 bias
        per_row = (2 * C_pad * itm                # x tile (double-buffered)
                   + 2 * O_pad * itm              # out tile (double-buffered)
                   + O_pad * 4                    # f32 accumulator scratch
                   + 4 * cand_th * 4)             # h / p / q / act temporaries
        avail = budget - fixed
        if avail <= 0:
            continue
        cand_tm = (avail // per_row) // sub * sub
        if cand_tm >= min(256, _round_up(M, sub)) or cand_th == 128:
            th, tm_budget = cand_th, max(sub, cand_tm)
            break
    if th is None:                                # pathological fall-back
        th, tm_budget = 128, 256

    if tm is None:
        tm = tm_budget
        # Keep >= 4 token steps when M permits: pipelining + v7x megacore split.
        tm = min(tm, max(128, _round_up(-(-M // 4), sub)))
    tm = max(sub, min(_round_up(tm, sub), _round_up(M, sub)))

    # Prefer a token tile that divides M exactly -> no padded HBM copy of x and
    # no sliced copy of the output.
    M_pad = _round_up(M, tm)
    t = tm
    while t >= sub:
        if M % t == 0:
            tm, M_pad = t, M
            break
        t -= sub

    nk = H_pad // th
    grid = (M_pad // tm, nk)

    # ---- host-side layout prep (zero padding is mathematically inert) --------
    x2 = x.reshape(M, C)
    if (M_pad, C_pad) != (M, C):
        x2 = jnp.pad(x2, ((0, M_pad - M), (0, C_pad - C)))
    w1p = w1 if (C_pad, H_pad) == (C, H) else jnp.pad(w1, ((0, C_pad - C), (0, H_pad - H)))
    # NOTE: padded hidden channels evaluate act(0) = a0 != 0; correctness relies
    # on the corresponding w2 rows below being zero-padded (they are).
    w2p = w2 if (H_pad, O_pad) == (H, O) else jnp.pad(w2, ((0, H_pad - H), (0, O_pad - O)))
    b2p = jnp.pad(b2.astype(jnp.float32).reshape(1, O), ((0, 0), (0, O_pad - O)))

    # Merged (8, H_pad) f32 operand: row 0 = fc1 bias, rows 1..4 = |den| coeffs.
    bd = jnp.zeros((8, H_pad), jnp.float32)
    bd = bd.at[0, :H].set(b1.reshape(H).astype(jnp.float32))
    bd = bd.at[1:5, :H].set(jnp.abs(dcoef).astype(jnp.float32))

    # Grid-invariant operands get a single VMEM buffer (no wasted 2nd copy).
    def _wspec(shape, index_map):
        if nk == 1:
            return pl.BlockSpec(shape, index_map, pipeline_mode=pl.Buffered(1))
        return pl.BlockSpec(shape, index_map)

    flops = 2 * M_pad * H_pad * (C_pad + O_pad)
    bytes_accessed = (M_pad * (C_pad + O_pad) * itm
                      + (C_pad + O_pad) * H_pad * itm
                      + 4 * (8 * H_pad + O_pad))

    kernel = functools.partial(kan_kernel, act_dtype=act_dtype,
                               approx_recip=approx_recip)

    out = pl.pallas_call(
        kernel,
        out_shape=jax.ShapeDtypeStruct((M_pad, O_pad), x.dtype),
        grid_spec=pltpu.PrefetchScalarGridSpec(
            num_scalar_prefetch=0,
            grid=grid,
            in_specs=[
                pl.BlockSpec((tm, C_pad), lambda i, k: (i, 0)),        # x tile
                _wspec((C_pad, th), lambda i, k: (0, k)),              # fc1 weight
                _wspec((8, th), lambda i, k: (0, k)),                  # b1 + |den|
                _wspec((th, O_pad), lambda i, k: (k, 0)),              # fc2 weight
                pl.BlockSpec((1, O_pad), lambda i, k: (0, 0),
                             pipeline_mode=pl.Buffered(1)),            # fc2 bias
            ],
            out_specs=pl.BlockSpec((tm, O_pad), lambda i, k: (i, 0)),
            scratch_shapes=[pltpu.VMEM((tm, O_pad), jnp.float32)],
        ),
        compiler_params=pltpu.CompilerParams(
            dimension_semantics=("parallel", "arbitrary"),
            vmem_limit_bytes=vmem_limit,
        ),
        cost_estimate=pl.CostEstimate(
            flops=flops,
            transcendentals=M_pad * H_pad,       # one reciprocal per hidden elem
            bytes_accessed=bytes_accessed,
        ),
    )(x2, w1p, bd, w2p, b2p)

    return out[:M, :O].reshape(B, N, O)


def kan_reference(x, w1, b1, w2, b2, dcoef, act_dtype=jnp.float32):
    """Pure-JAX reference (same dtype / accumulation policy as the kernel)."""
    B, N, C = x.shape
    xf = x.reshape(-1, C)
    h = jnp.dot(xf, w1, preferred_element_type=jnp.float32) + b1.astype(jnp.float32)
    hh = h.astype(act_dtype)
    a0, a1, a2, a3, a4, a5 = GELU_NUM
    p = a0 + hh * (a1 + hh * (a2 + hh * (a3 + hh * (a4 + hh * a5))))
    ah = jnp.abs(hh)
    d = jnp.abs(dcoef).astype(act_dtype)
    q = 1.0 + ah * (d[0:1] + ah * (d[1:2] + ah * (d[2:3] + ah * d[3:4])))
    act = (p.astype(jnp.float32) / q.astype(jnp.float32)).astype(w2.dtype)
    out = jnp.dot(act, w2, preferred_element_type=jnp.float32) + b2.astype(jnp.float32)
    return out.astype(x.dtype).reshape(B, N, -1)


if __name__ == "__main__":
    # Small but lane-dense problem: batch=2, seq=128, in=hidden=out=128.
    # Auto-tiling picks tm=128 here -> a 2-step token grid with real pipelining.
    B, N = 2, 128
    in_features = 128
    hidden_features = 128      # default: hidden = in_features
    out_features = 128         # default: out = in_features
    assert hidden_features % NUM_GROUPS == 0

    key = jax.random.PRNGKey(0)
    kx, k1, k2, k3, k4 = jax.random.split(key, 5)

    x = jax.random.normal(kx, (B, N, in_features), jnp.float32)

    # Deterministic "nn.Linear"-style params (weights pre-transposed to (in, out)).
    w1 = jax.random.normal(k1, (in_features, hidden_features), jnp.float32) / jnp.sqrt(in_features)
    b1 = 0.01 * jax.random.normal(k2, (1, hidden_features), jnp.float32)
    w2 = jax.random.normal(k3, (hidden_features, out_features), jnp.float32) / jnp.sqrt(hidden_features)
    b2 = 0.01 * jax.random.normal(k4, (1, out_features), jnp.float32)

    # KAT_Group act2 denominator coefficients: analytic init per group, expanded
    # to one coefficient vector per hidden channel -> shape (4, H).
    group_size = hidden_features // NUM_GROUPS
    den = jnp.array(GELU_DEN, jnp.float32)                    # (4,)
    den_per_group = jnp.tile(den[:, None], (1, NUM_GROUPS))   # (4, num_groups)
    dcoef = jnp.repeat(den_per_group, group_size, axis=1)     # (4, H)

    # --- f32 path: tight correctness check (f32 activation, exact reciprocal) --
    out_f32 = jax.block_until_ready(kan_forward(x, w1, b1, w2, b2, dcoef))
    ref_f32 = kan_reference(x, w1, b1, w2, b2, dcoef)
    assert out_f32.shape == (B, N, out_features)
    assert jnp.allclose(out_f32, ref_f32, atol=1e-4, rtol=1e-4), "f32 mismatch vs reference"

    # --- bf16 fast path: bf16 MXU operands, f32 accumulation --------------------
    xb = x.astype(jnp.bfloat16)
    w1b = w1.astype(jnp.bfloat16)
    w2b = w2.astype(jnp.bfloat16)
    out_bf16 = jax.block_until_ready(kan_forward(xb, w1b, b1, w2b, b2, dcoef))
    act_dt = jnp.bfloat16 if _has_bf16_vpu() else jnp.float32
    ref_bf16 = kan_reference(xb, w1b, b1, w2b, b2, dcoef, act_dtype=act_dt)
    assert out_bf16.shape == (B, N, out_features)
    assert jnp.allclose(out_bf16.astype(jnp.float32), ref_bf16.astype(jnp.float32),
                        atol=2e-2, rtol=2e-2), "bf16 mismatch vs reference"

    print("KERNEL_OK")
</pallas_src>

<mosaic_0001>
module attributes {stable_mosaic.version = 11 : i64} {
  func.func @kan_kernel(%arg0: i32, %arg1: i32, %arg2: memref<128x128xf32, #tpu.memory_space<vmem>>, %arg3: memref<128x128xf32, #tpu.memory_space<vmem>>, %arg4: memref<8x128xf32, #tpu.memory_space<vmem>>, %arg5: memref<128x128xf32, #tpu.memory_space<vmem>>, %arg6: memref<1x128xf32, #tpu.memory_space<vmem>>, %arg7: memref<128x128xf32, #tpu.memory_space<vmem>>, %arg8: memref<128x128xf32, #tpu.memory_space<vmem>>) attributes {dimension_semantics = [#tpu.dimension_semantics<parallel>, #tpu.dimension_semantics<arbitrary>], iteration_bounds = array<i64: 2, 1>, scalar_prefetch = 0 : i64, scratch_operands = 1 : i64, tpu.core_type = #tpu.core_type<tc>, window_params = [{transform_indices = @transform_0, window_bounds = array<i64: 128, 128>}, {pipeline_mode = #tpu.pipeline_mode<synchronous>, transform_indices = @transform_1, window_bounds = array<i64: 128, 128>}, {pipeline_mode = #tpu.pipeline_mode<synchronous>, transform_indices = @transform_2, window_bounds = array<i64: 8, 128>}, {pipeline_mode = #tpu.pipeline_mode<synchronous>, transform_indices = @transform_3, window_bounds = array<i64: 128, 128>}, {pipeline_mode = #tpu.pipeline_mode<synchronous>, transform_indices = @transform_4, window_bounds = array<i64: 1, 128>}, {transform_indices = @transform_5, window_bounds = array<i64: 128, 128>}]} {
    %c0 = arith.constant 0 : index
    %c0_0 = arith.constant 0 : index
    %0 = vector.load %arg2[%c0, %c0_0] : memref<128x128xf32, #tpu.memory_space<vmem>>, vector<128x128xf32>
    %c0_1 = arith.constant 0 : index
    %c0_2 = arith.constant 0 : index
    %1 = vector.load %arg3[%c0_1, %c0_2] : memref<128x128xf32, #tpu.memory_space<vmem>>, vector<128x128xf32>
    %cst = arith.constant dense<0.000000e+00> : vector<128x128xf32>
    %2 = tpu.matmul %0, %1, %cst {dimension_numbers = #tpu.dot_dimension_numbers<[1], [0], [0], [1], [0, 0, 1, 1], [], []>} : vector<128x128xf32>, vector<128x128xf32>, vector<128x128xf32> -> vector<128x128xf32>
    %c0_3 = arith.constant 0 : index
    %c0_4 = arith.constant 0 : index
    %3 = vector.load %arg4[%c0_3, %c0_4] : memref<8x128xf32, #tpu.memory_space<vmem>>, vector<8x128xf32>
    %4 = vector.extract_strided_slice %3 {offsets = [0, 0], sizes = [1, 128], strides = [1, 1]} : vector<8x128xf32> to vector<1x128xf32>
    %5 = vector.broadcast %4 : vector<1x128xf32> to vector<128x128xf32>
    %6 = arith.addf %2, %5 : vector<128x128xf32>
    %cst_5 = arith.constant 0.00290283957 : f32
    %7 = vector.broadcast %cst_5 : f32 to vector<128x128xf32>
    %8 = arith.mulf %6, %7 : vector<128x128xf32>
    %cst_6 = arith.constant 2.435590e-02 : f32
    %9 = vector.broadcast %cst_6 : f32 to vector<128x128xf32>
    %10 = arith.addf %9, %8 : vector<128x128xf32>
    %11 = arith.mulf %6, %10 : vector<128x128xf32>
    %cst_7 = arith.constant 0.130227193 : f32
    %12 = vector.broadcast %cst_7 : f32 to vector<128x128xf32>
    %13 = arith.addf %12, %11 : vector<128x128xf32>
    %14 = arith.mulf %6, %13 : vector<128x128xf32>
    %cst_8 = arith.constant 0.415863633 : f32
    %15 = vector.broadcast %cst_8 : f32 to vector<128x128xf32>
    %16 = arith.addf %15, %14 : vector<128x128xf32>
    %17 = arith.mulf %6, %16 : vector<128x128xf32>
    %cst_9 = arith.constant 0.508049726 : f32
    %18 = vector.broadcast %cst_9 : f32 to vector<128x128xf32>
    %19 = arith.addf %18, %17 : vector<128x128xf32>
    %20 = arith.mulf %6, %19 : vector<128x128xf32>
    %cst_10 = arith.constant -0.0012423594 : f32
    %21 = vector.broadcast %cst_10 : f32 to vector<128x128xf32>
    %22 = arith.addf %21, %20 : vector<128x128xf32>
    %23 = math.absf %6 : vector<128x128xf32>
    %24 = vector.extract_strided_slice %3 {offsets = [1, 0], sizes = [1, 128], strides = [1, 1]} : vector<8x128xf32> to vector<1x128xf32>
    %25 = vector.extract_strided_slice %3 {offsets = [2, 0], sizes = [1, 128], strides = [1, 1]} : vector<8x128xf32> to vector<1x128xf32>
    %26 = vector.extract_strided_slice %3 {offsets = [3, 0], sizes = [1, 128], strides = [1, 1]} : vector<8x128xf32> to vector<1x128xf32>
    %27 = vector.extract_strided_slice %3 {offsets = [4, 0], sizes = [1, 128], strides = [1, 1]} : vector<8x128xf32> to vector<1x128xf32>
    %28 = vector.broadcast %27 : vector<1x128xf32> to vector<128x128xf32>
    %29 = arith.mulf %23, %28 : vector<128x128xf32>
    %30 = vector.broadcast %26 : vector<1x128xf32> to vector<128x128xf32>
    %31 = arith.addf %30, %29 : vector<128x128xf32>
    %32 = arith.mulf %23, %31 : vector<128x128xf32>
    %33 = vector.broadcast %25 : vector<1x128xf32> to vector<128x128xf32>
    %34 = arith.addf %33, %32 : vector<128x128xf32>
    %35 = arith.mulf %23, %34 : vector<128x128xf32>
    %36 = vector.broadcast %24 : vector<1x128xf32> to vector<128x128xf32>
    %37 = arith.addf %36, %35 : vector<128x128xf32>
    %38 = arith.mulf %23, %37 : vector<128x128xf32>
    %cst_11 = arith.constant 1.000000e+00 : f32
    %39 = vector.broadcast %cst_11 : f32 to vector<128x128xf32>
    %40 = arith.addf %39, %38 : vector<128x128xf32>
    %41 = tpu.reciprocal %40 : vector<128x128xf32> -> vector<128x128xf32>
    %42 = arith.mulf %22, %41 : vector<128x128xf32>
    %c0_12 = arith.constant 0 : index
    %c0_13 = arith.constant 0 : index
    %43 = vector.load %arg5[%c0_12, %c0_13] : memref<128x128xf32, #tpu.memory_space<vmem>>, vector<128x128xf32>
    %cst_14 = arith.constant dense<0.000000e+00> : vector<128x128xf32>
    %44 = tpu.matmul %42, %43, %cst_14 {dimension_numbers = #tpu.dot_dimension_numbers<[1], [0], [0], [1], [0, 0, 1, 1], [], []>} : vector<128x128xf32>, vector<128x128xf32>, vector<128x128xf32> -> vector<128x128xf32>
    %c0_i32 = arith.constant 0 : i32
    %45 = arith.cmpi eq, %arg1, %c0_i32 : i32
    %46 = arith.extui %45 : i1 to i32
    %c0_i32_15 = arith.constant 0 : i32
    %47 = arith.cmpi ne, %46, %c0_i32_15 : i32
    scf.if %47 {
      %c0_20 = arith.constant 0 : index
      %c0_21 = arith.constant 0 : index
      %54 = vector.load %arg8[%c0_20, %c0_21] : memref<128x128xf32, #tpu.memory_space<vmem>>, vector<128x128xf32>
      tpu.vector_store %arg8[%c0_20, %c0_21], %44 {strides = array<i32>} : memref<128x128xf32, #tpu.memory_space<vmem>>, vector<128x128xf32>,
    } else {
    }
    %c0_i32_16 = arith.constant 0 : i32
    %48 = arith.cmpi ne, %arg1, %c0_i32_16 : i32
    %49 = arith.extui %48 : i1 to i32
    %c0_i32_17 = arith.constant 0 : i32
    %50 = arith.cmpi ne, %49, %c0_i32_17 : i32
    scf.if %50 {
      %c0_20 = arith.constant 0 : index
      %c0_21 = arith.constant 0 : index
      %54 = vector.load %arg8[%c0_20, %c0_21] : memref<128x128xf32, #tpu.memory_space<vmem>>, vector<128x128xf32>
      %55 = arith.addf %54, %44 : vector<128x128xf32>
      %c0_22 = arith.constant 0 : index
      %c0_23 = arith.constant 0 : index
      %56 = vector.load %arg8[%c0_22, %c0_23] : memref<128x128xf32, #tpu.memory_space<vmem>>, vector<128x128xf32>
      tpu.vector_store %arg8[%c0_22, %c0_23], %55 {strides = array<i32>} : memref<128x128xf32, #tpu.memory_space<vmem>>, vector<128x128xf32>,
    } else {
    }
    %c0_i32_18 = arith.constant 0 : i32
    %51 = arith.cmpi eq, %arg1, %c0_i32_18 : i32
    %52 = arith.extui %51 : i1 to i32
    %c0_i32_19 = arith.constant 0 : i32
    %53 = arith.cmpi ne, %52, %c0_i32_19 : i32
    scf.if %53 {
      %c0_20 = arith.constant 0 : index
      %c0_21 = arith.constant 0 : index
      %54 = vector.load %arg8[%c0_20, %c0_21] : memref<128x128xf32, #tpu.memory_space<vmem>>, vector<128x128xf32>
      %c0_22 = arith.constant 0 : index
      %c0_23 = arith.constant 0 : index
      %55 = vector.load %arg6[%c0_22, %c0_23] : memref<1x128xf32, #tpu.memory_space<vmem>>, vector<1x128xf32>
      %56 = vector.broadcast %55 : vector<1x128xf32> to vector<128x128xf32>
      %57 = arith.addf %54, %56 : vector<128x128xf32>
      %c0_24 = arith.constant 0 : index
      %c0_25 = arith.constant 0 : index
      %58 = vector.load %arg7[%c0_24, %c0_25] : memref<128x128xf32, #tpu.memory_space<vmem>>, vector<128x128xf32>
      tpu.vector_store %arg7[%c0_24, %c0_25], %57 {strides = array<i32>} : memref<128x128xf32, #tpu.memory_space<vmem>>, vector<128x128xf32>,
    } else {
    }
    return
  }
  func.func @transform_0(%arg0: i32, %arg1: i32) -> (i32, i32) {
    %c0_i32 = arith.constant 0 : i32
    %c0_i32_0 = arith.constant 0 : i32
    return %arg0, %c0_i32 : i32, i32
  }
  func.func @transform_1(%arg0: i32, %arg1: i32) -> (i32, i32) {
    %c0_i32 = arith.constant 0 : i32
    %c0_i32_0 = arith.constant 0 : i32
    return %c0_i32, %arg1 : i32, i32
  }
  func.func @transform_2(%arg0: i32, %arg1: i32) -> (i32, i32) {
    %c0_i32 = arith.constant 0 : i32
    %c0_i32_0 = arith.constant 0 : i32
    return %c0_i32, %arg1 : i32, i32
  }
  func.func @transform_3(%arg0: i32, %arg1: i32) -> (i32, i32) {
    %c0_i32 = arith.constant 0 : i32
    %c0_i32_0 = arith.constant 0 : i32
    return %arg1, %c0_i32 : i32, i32
  }
  func.func @transform_4(%arg0: i32, %arg1: i32) -> (i32, i32) {
    %c0_i32 = arith.constant 0 : i32
    %c0_i32_0 = arith.constant 0 : i32
    %c0_i32_1 = arith.constant 0 : i32
    return %c0_i32, %c0_i32_0 : i32, i32
  }
  func.func @transform_5(%arg0: i32, %arg1: i32) -> (i32, i32) {
    %c0_i32 = arith.constant 0 : i32
    %c0_i32_0 = arith.constant 0 : i32
    return %arg0, %c0_i32 : i32, i32
  }
}

</mosaic_0001>

<bundles_post_ra>
// kernel: tpu_custom_call.1
= control target key start
LH: loop header
LB: loop body
LE: loop exit
PB: predicated region body
PF: predicated region fallthrough
CT: control target
= control target key end

     0   :  { %s2453_s0 = inlined_call_operand.hbm [shape: f32[256,128], index: 0, kind: input, shape index: {}]   ;;  %s2454_s1 = inlined_call_operand.hbm [shape: f32[128,128], index: 1, kind: input, shape index: {}]   ;;  %s2455_s2 = inlined_call_operand.hbm [shape: f32[8,128], index: 2, kind: input, shape index: {}]   ;;  %s2456_s3 = inlined_call_operand.hbm [shape: f32[128,128], index: 3, kind: input, shape index: {}]   ;;  %s2457_s4 = inlined_call_operand.vmem [shape: f32[1,128], index: 4, kind: input, shape index: {}]   ;;  %s2458_s5 = inlined_call_operand.hbm [shape: f32[256,128], index: 5, kind: output, shape index: {}]  }
   0x1   :  { %2465 = sst [smem:[#allocation16_spill]] %s2454_s1 }
   0x2   :  { %10 = vsyncpa [#allocation4], 0 }
   0x3   :  { %12 = vsyncpa [#allocation4 + $0x1], 0 }
   0x4   :  { %13 = vsyncpa [#allocation7], 0 }
   0x5   :  { %14 = vsyncpa [#allocation10], 0 }
   0x6   :  { %15 = vsyncpa [#allocation5], 0 }
   0x7   :  { %17 = vsyncpa [#allocation5 + $0x1], 0  ;;  %s1841_s18 = smov 0   ;;  %s1843_s19 = smov 0  }
   0x8   :  { %s1845_s20 = smov 0   ;;  %s1847_s21 = smov 0  }
   0x9   :  { %s1849_s22 = smov 0   ;;  %s1851_s23 = smov 0  }
   0xa LB: > { %s1277_s24 = sadd.s32 4294967295, %s1800_s23   ;;  %s1278_s25 = sadd.s32 4294967294, %s1800_s23   ;;  %s1800_s23 = sphi %s1851_s23, %s23_s23   ;;  %s1796_s22 = sphi %s1849_s22, %s2486_s22   ;;  %s1792_s21 = sphi %s1847_s21, %s2485_s21   ;;  %s1788_s20 = sphi %s1845_s20, %s2484_s20   ;;  %s1784_s19 = sphi %s1843_s19, %s2483_s19   ;;  %s1780_s18 = sphi %s1841_s18, %s2482_s18  }
   0xb   : > { %p55_p0 = scmp.ne.s32.totalorder %s1784_s19, %s1780_s18  ;;  %p1875_p1 = scmp.eq.s32.totalorder %s1277_s24, 0 }
   0xc   : > { %p1879_p2 = scmp.eq.s32.totalorder %s1277_s24, 1  ;;  %p184_p3 = scmp.eq.s32.totalorder %s1278_s25, 1 }
   0xd   : > { %s2466_s26 = scalar_select %p1875_p1, 1, 0 }
   0xe   : > { %p1885_p4 = por %p1875_p1, %p55_p0  ;;  %p1279_p5 = scmp.ge.s32.totalorder %s1800_s23, 1 }
   0xf   : > { %p1890_p6 = por %p184_p3, %p55_p0  ;;  %p191_p7 = scmp.lt.s32.totalorder %s1800_s23, 3 }
  0x10   : > { %s2468_s28 = scalar_select %p1885_p4, 1, 0 }
  0x11   : > { %s2469_s29 = scalar_select %p1890_p6, 1, 0 }
  0x12   : > { %p1895_p8 = pnand %p1279_p5, %p191_p7  ;;  %s1802_s6 = smov [#allocation6]  }
  0x13   : > { %s205_s7 = sshll.u32 %s1802_s6, 4  ;;  %s1803_s9 = smov [#allocation8]   ;;  %s206_s7 = int_to_ptr.vmem [resolvable:$true] %s205_s7 }
  0x14   : > { %s2470_s30 = scalar_select %p1895_p8, 1, 0 }
  0x15   : > { %p1493_p9 = pneg %p1895_p8  ;;  %s221_s10 = sshll.u32 %s1803_s9, 4  ;;  %s222_s10 = int_to_ptr.vmem [resolvable:$true] %s221_s10 }
  0x16   : > { %s1804_s11 = smov [#allocation9]   ;;  %s1617_s13 = scalar_lea.vmem %s206_s7, 2048 }
  0x17   : > { %p1904_p11 = pnand %p1493_p9, %p1875_p1  ;;  %s234_s12 = sshll.u32 %s1804_s11, 4  ;;  %s235_s12 = int_to_ptr.vmem [resolvable:$true] %s234_s12 }
  0x18   : > { %p1618_p13 = scmp.ne.s32.totalorder %s206_s7, %s1617_s13  ;;  %p1625_p5 = scmp.lt.s32.totalorder %s206_s7, %s206_s7 }
  0x19   : > { %p1608_p12 = pneg %p1904_p11  ;;  %p1626_p7 = scmp.lt.s32.totalorder %s1617_s13, %s1617_s13 }
  0x1b   : > { %p1620_p0 = pnand %p1618_p13, %p1608_p12  ;;  %p1627_p9 = por %p1626_p7, %p1625_p5 }
  0x1d   : > { %p1621_p3 = pneg %p1620_p0 }
  0x1f   : > { %p1628_p10 = pnand %p1627_p9, %p1621_p3 }
  0x21   : > { %1631 = shalt.err (!%p1628_p10)
}
  0x22   : > { %s2463_s14 = smov 128   ;;  %s2464_s15 = smov 8  }
  0x23   : > { %s2472_s1 = sld [smem:[#allocation16_spill]]  ;;  %s1643_s24 = scalar_lea.vmem %s222_s10, 128 }
  0x24   : > { %p1644_p13 = scmp.ne.s32.totalorder %s222_s10, %s1643_s24  ;;  %p1651_p3 = scmp.lt.s32.totalorder %s222_s10, %s222_s10 }
  0x25   : > { %p1652_p10 = scmp.lt.s32.totalorder %s1643_s24, %s1643_s24 }
  0x26   : > { %p1646_p0 = pnand %p1644_p13, %p1608_p12 }
  0x27   : > { %p1653_p7 = por %p1652_p10, %p1651_p3 }
  0x28   : > { %p1647_p5 = pneg %p1646_p0 }
  0x29   : > { %1496 = dma.hbm_to_vmem [thread:$0]  (!%p1904_p11), %s2472_s1, 2048, %s206_s7, [#allocation7], %s2463_s14, %s2463_s14, %s2464_s15  }
  0x2a   : > { %p1654_p9 = pnand %p1653_p7, %p1647_p5 }
  0x2c   : > { %1657 = shalt.err (!%p1654_p9)
}
  0x2d   : > { %1499 = dma.hbm_to_vmem [thread:$0]  (!%p1904_p11), %s2455_s2, 128, %s222_s10, [#allocation7]  }
  0x2e   : > { %s1669_s7 = scalar_lea.vmem %s235_s12, 2048  ;;  %p1677_p0 = scmp.lt.s32.totalorder %s235_s12, %s235_s12 }
  0x2f   : > { %p1670_p6 = scmp.ne.s32.totalorder %s235_s12, %s1669_s7  ;;  %p1678_p4 = scmp.lt.s32.totalorder %s1669_s7, %s1669_s7 }
  0x31   : > { %p1672_p1 = pnand %p1670_p6, %p1608_p12  ;;  %p1679_p8 = por %p1678_p4, %p1677_p0 }
  0x33   : > { %p1673_p13 = pneg %p1672_p1 }
  0x35   : > { %p1680_p3 = pnand %p1679_p8, %p1673_p13 }
  0x37   : > { %1683 = shalt.err (!%p1680_p3)
}
  0x38   : > { %1502 = dma.hbm_to_vmem [thread:$0]  (!%p1904_p11), %s2456_s3, 2048, %s235_s12, [#allocation10], %s2463_s14, %s2463_s14, %s2464_s15  }
  0x39   : > { %s42_s10 = sadd.s32 1, %s1788_s20  ;;  %s35_s8 = sadd.s32 1, %s1796_s22 }
  0x3a   : > { %p49_p1 = scmp.ne.s32.totalorder %s1788_s20, %s1784_s19  ;;  %p37_p4 = scmp.ge.s32.totalorder %s35_s8, 2 }
  0x3b   : > { %p50_p6 = scmp.eq.s32.totalorder %s1800_s23, 0  ;;  %p1514_p12 = scmp.lt.s32.totalorder %s1800_s23, 2 }
  0x3c   : > { %p1947_p8 = por %p1879_p2, %p49_p1  ;;  %s2488_s8 = smov (%p37_p4, %s35_s8), 0 }
  0x3d   : > { %p51_p5 = por %p50_p6, %p49_p1  ;;  %s251_s16 = sand.u32 1, %s1788_s20  }
  0x3e   : > { %s39_s17 = ssub.s32 %s1796_s22, %s2488_s8  ;;  %s1284_s12 = sshll.u32 %s251_s16, 7 }
  0x3f   : > { %p40_p10 = scmp.eq.s32.totalorder %s39_s17, 0  ;;  %s1299_s24 = sshll.u32 %s1796_s22, 11 }
  0x40   : > { %s261_s27 = scalar_lea.hbm %s2453_s0, %s1299_s24  ;;  %s255_s9 = scalar_lea.vmem [#allocation3], %s1284_s12 }
  0x41   : > { %s1959_s25 = scalar_select %p40_p10, %s1788_s20, %s42_s10  }
  0x42   : > { %s262_s11 = sshll.u32 %s255_s9, 4  ;;  %p1966_p2 = pnand %p1514_p12, %p51_p5  ;;  %s263_s11 = int_to_ptr.vmem [resolvable:$true] %s262_s11 }
  0x43   : > { %s252_s15 = scalar_lea.sflag [#allocation4], %s251_s16  ;;  %s1697_s17 = scalar_lea.vmem %s263_s11, 2048 }
  0x44   : > { %p1686_p11 = pneg %p1966_p2  ;;  %p1698_p7 = scmp.ne.s32.totalorder %s263_s11, %s1697_s17 }
  0x45   : > { %s1807_s10 = smov [#allocation3]  }
  0x46   : > { %p1700_p9 = pnand %p1698_p7, %p1686_p11  ;;  %s1702_s1 = sshll.u32 %s1807_s10, 4  ;;  %s1703_s1 = int_to_ptr.vmem [resolvable:$false] %s1702_s1 }
  0x47   : > { %s1704_s24 = scalar_lea.vmem %s1703_s1, 4096  ;;  %p1705_p0 = scmp.lt.s32.totalorder %s263_s11, %s1703_s1 }
  0x48   : > { %p1701_p13 = pneg %p1700_p9  ;;  %p1706_p3 = scmp.lt.s32.totalorder %s1704_s24, %s1697_s17 }
  0x4a   : > { %p1707_p1 = por %p1706_p3, %p1705_p0 }
  0x4c   : > { %p1708_p4 = pnand %p1707_p1, %p1701_p13 }
  0x4e   : > { %1711 = shalt.err (!%p1708_p4)
}
  0x4f   : > { %s2475_s12 = smov 8   ;;  %s2476_s6 = smov 128  }
  0x50   : > { %1506 = dma.hbm_to_vmem [thread:$0]  (!%p1966_p2), %s261_s27, 2048, %s263_s11, %s252_s15, %s2476_s6, %s2476_s6, %s2475_s12  }
  0x51   : > { %p2477_p6 = scmp.ne.s32.totalorder %s2470_s30, 0 }
  0x52   : > { %s1980_s16 = sand.u32 (!%p2477_p6), 1, %s1784_s19   ;;  %p2478_p12 = scmp.ne.s32.totalorder (!%p2477_p6), %s2468_s28, 0 }
  0x53   : > { %274 = sbr.rel (%p2477_p6) target bundleno = 638 (0x27e), region = 40  ;;  %s1288_s1 = sshll.u32 (!%p2477_p6), %s1980_s16, 7 }
  0x54   : > { %s277_s7 = scalar_lea.sflag (!%p2477_p6), [#allocation4], %s1980_s16  ;;  %s1986_s9 = scalar_lea.vmem (!%p2477_p6), [#allocation3], %s1288_s1 }
  0x58   : > { %1763 = dma.done.wait (%p2478_p12), %s277_s7, 2048  }
  0x59   : > { %1765 = vsyncadd (%p2478_p12), %s277_s7, 4294965248  ;;  %p2479_p5 = scmp.ne.s32.totalorder %s2466_s26, 0 }
  0x5b   : > { %1767 = dma.done.wait (%p2479_p5), [#allocation7], 2176  }
  0x5c   : > { %1769 = vsyncadd (%p2479_p5), [#allocation7], 4294965120 }
  0x5d   : > { %1771 = dma.done.wait (%p2479_p5), [#allocation10], 2048  }
  0x5e   : > { %1773 = vsyncadd (%p2479_p5), [#allocation10], 4294965248  ;;  %v353_v0 = vld [vmem:[#allocation6 + $0x78] sm:$0xff]  ;;  %v352_v1 = vld [vmem:[#allocation6 + $0x70] sm:$0xff]  ;;  %v355_v48 = vlaneseq  ;;  %s2380_s30 = scalar_lea.vmem [#allocation11], %s1288_s1  ;;  %s1300_s14 = sshll.u32 %s1792_s21, 11 }
  0x5f   : > { %1365 = vmatprep.subr.mxu0 %v353_v0  ;;  %v351_v2 = vld [vmem:[#allocation6 + $0x68] sm:$0xff]  ;;  %v350_v3 = vld [vmem:[#allocation6 + $0x60] sm:$0xff]  ;;  %v349_v5 = vld [vmem:[#allocation6 + $0x58] sm:$0xff]  ;;  %s1161_s15 = sshll.u32 %s2380_s30, 4  ;;  %s2401_s17 = scalar_lea.hbm %s2458_s5, %s1300_s14  ;;  %s2403_s15 = int_to_ptr.vmem [resolvable:$true] %s1161_s15 }
  0x60   : > { %1366 = vmatpush3.msra.mxu0 %v353_v0  ;;  %v322_v4 = vld [vmem:[%s1986_s9] sm:$0xff]  ;;  %v348_v6 = vld [vmem:[#allocation6 + $0x50] sm:$0xff]  ;;  %v347_v7 = vld [vmem:[#allocation6 + $0x48] sm:$0xff]  ;;  %v356_v49 = vshrl.u32 %v355_v48, 7  ;;  %s1148_s10 = scalar_lea.sflag [#allocation5], %s1980_s16  ;;  %s1712_s24 = scalar_lea.vmem %s2403_s15, 2048 }
  0x61   : > { %1367 = vmatprep.subr.mxu0 %v352_v1  ;;  %1397 = vmatprep.mubr.f32.mxu0 %v322_v4  ;;  %v346_v8 = vld [vmem:[#allocation6 + $0x40] sm:$0xff]  ;;  %v345_v9 = vld [vmem:[#allocation6 + $0x38] sm:$0xff]  ;;  %v344_v10 = vld [vmem:[#allocation6 + $0x30] sm:$0xff]  ;;  %p1713_p10 = scmp.ne.s32.totalorder %s2403_s15, %s1712_s24  ;;  %s1808_s21 = smov [#allocation11]  }
  0x62   : > { %1368 = vmatpush3.msra.mxu0 %v352_v1  ;;  %v343_v11 = vld [vmem:[#allocation6 + $0x28] sm:$0xff]  ;;  %v342_v12 = vld [vmem:[#allocation6 + $0x20] sm:$0xff]  ;;  %v341_v13 = vld [vmem:[#allocation6 + $0x18] sm:$0xff]  ;;  %v357_v50 = vsub.s32 0, %v356_v49  ;;  %v682_v53 = vsub.s32 4, %v356_v49  ;;  %v702_v54 = vsub.s32 3, %v356_v49 }
  0x63   : > { %1369 = vmatprep.subr.mxu0 %v351_v2  ;;  %v340_v14 = vld [vmem:[#allocation6 + $0x10] sm:$0xff]  ;;  %v339_v15 = vld [vmem:[#allocation6 + $0x8] sm:$0xff]  ;;  %v338_v16 = vld [vmem:[#allocation6] sm:$0xff]  ;;  %v738_v63 = vsub.s32 2, %v356_v49  ;;  %p1714_p2 = pnand %p1713_p10, %p1947_p8  ;;  %s1716_s12 = sshll.u32 %s1808_s21, 4  ;;  %s1717_s12 = int_to_ptr.vmem [resolvable:$false] %s1716_s12 }
  0x64   : > { %1370 = vmatpush3.msra.mxu0 %v351_v2  ;;  %v323_v17 = vld [vmem:[%s1986_s9 + $0x8] sm:$0xff]  ;;  %v324_v18 = vld [vmem:[%s1986_s9 + $0x10] sm:$0xff]  ;;  %v325_v19 = vld [vmem:[%s1986_s9 + $0x18] sm:$0xff]  ;;  %s1718_s6 = scalar_lea.vmem %s1717_s12, 4096  ;;  %p1719_p7 = scmp.lt.s32.totalorder %s2403_s15, %s1717_s12 }
  0x65   : > { %1371 = vmatprep.subr.mxu0 %v350_v3  ;;  %v326_v20 = vld [vmem:[%s1986_s9 + $0x20] sm:$0xff]  ;;  %v327_v21 = vld [vmem:[%s1986_s9 + $0x28] sm:$0xff]  ;;  %v328_v22 = vld [vmem:[%s1986_s9 + $0x30] sm:$0xff]  ;;  %p1715_p11 = pneg %p1714_p2  ;;  %p1720_p9 = scmp.lt.s32.totalorder %s1718_s6, %s1712_s24 }
  0x66   : > { %1372 = vmatpush3.msra.mxu0 %v350_v3  ;;  %v329_v23 = vld [vmem:[%s1986_s9 + $0x38] sm:$0xff]  ;;  %v330_v24 = vld [vmem:[%s1986_s9 + $0x40] sm:$0xff]  ;;  %v331_v25 = vld [vmem:[%s1986_s9 + $0x48] sm:$0xff] }
  0x67   : > { %1373 = vmatprep.subr.mxu0 %v349_v5  ;;  %v332_v26 = vld [vmem:[%s1986_s9 + $0x50] sm:$0xff]  ;;  %v333_v27 = vld [vmem:[%s1986_s9 + $0x58] sm:$0xff]  ;;  %v334_v28 = vld [vmem:[%s1986_s9 + $0x60] sm:$0xff]  ;;  %p1721_p13 = por %p1720_p9, %p1719_p7 }
  0x68   : > { %1374 = vmatpush3.msra.mxu0 %v349_v5  ;;  %v335_v29 = vld [vmem:[%s1986_s9 + $0x68] sm:$0xff]  ;;  %v336_v30 = vld [vmem:[%s1986_s9 + $0x70] sm:$0xff]  ;;  %v337_v31 = vld [vmem:[%s1986_s9 + $0x78] sm:$0xff]  ;;  %v774_v5 = vsub.s32 1, %v356_v49 }
  0x69   : > { %1375 = vmatprep.subr.mxu0 %v348_v6  ;;  %v871_v32 = vld [vmem:[#allocation9 + $0x78] sm:$0xff]  ;;  %v870_v33 = vld [vmem:[#allocation9 + $0x70] sm:$0xff]  ;;  %v869_v34 = vld [vmem:[#allocation9 + $0x68] sm:$0xff]  ;;  %p1722_p0 = pnand %p1721_p13, %p1715_p11 }
  0x6a   : > { %1376 = vmatpush3.msra.mxu0 %v348_v6  ;;  %1421 = vmatprep.subr.mxu1 %v871_v32  ;;  %v868_v35 = vld [vmem:[#allocation9 + $0x60] sm:$0xff]  ;;  %v867_v36 = vld [vmem:[#allocation9 + $0x58] sm:$0xff]  ;;  %v866_v37 = vld [vmem:[#allocation9 + $0x50] sm:$0xff] }
  0x6b   : > { %1377 = vmatprep.subr.mxu0 %v347_v7  ;;  %1422 = vmatpush3.msra.mxu1 %v871_v32  ;;  %v865_v38 = vld [vmem:[#allocation9 + $0x48] sm:$0xff]  ;;  %v864_v39 = vld [vmem:[#allocation9 + $0x40] sm:$0xff]  ;;  %v863_v40 = vld [vmem:[#allocation9 + $0x38] sm:$0xff] }
  0x6c   : > { %1378 = vmatpush3.msra.mxu0 %v347_v7  ;;  %1423 = vmatprep.subr.mxu1 %v870_v33  ;;  %v862_v41 = vld [vmem:[#allocation9 + $0x30] sm:$0xff]  ;;  %v861_v42 = vld [vmem:[#allocation9 + $0x28] sm:$0xff]  ;;  %v860_v43 = vld [vmem:[#allocation9 + $0x20] sm:$0xff] }
  0x6d   : > { %1379 = vmatprep.subr.mxu0 %v346_v8  ;;  %1424 = vmatpush3.msra.mxu1 %v870_v33  ;;  %v859_v44 = vld [vmem:[#allocation9 + $0x18] sm:$0xff]  ;;  %v858_v45 = vld [vmem:[#allocation9 + $0x10] sm:$0xff]  ;;  %v857_v46 = vld [vmem:[#allocation9 + $0x8] sm:$0xff] }
  0x6e   : > { %1380 = vmatpush3.msra.mxu0 %v346_v8  ;;  %1425 = vmatprep.subr.mxu1 %v869_v34  ;;  %v856_v47 = vld [vmem:[#allocation9] sm:$0xff]  ;;  %v354_v51 = vld [vmem:[#allocation8] sm:$0xff] }
  0x6f   : > { %1381 = vmatprep.subr.mxu0 %v345_v9  ;;  %1426 = vmatpush3.msra.mxu1 %v869_v34  ;;  %v2016_v52 = vrot.slane %v354_v51, %v357_v50  ;;  %v2021_v57 = vrot.slane %v354_v51, %v682_v53  ;;  %v2026_v60 = vrot.slane %v354_v51, %v702_v54 }
  0x70   : > { %1382 = vmatpush3.msra.mxu0 %v345_v9  ;;  %1427 = vmatprep.subr.mxu1 %v868_v35 }
  0x71   : > { %1383 = vmatprep.subr.mxu0 %v344_v10  ;;  %1428 = vmatpush3.msra.mxu1 %v868_v35 }
  0x72   : > { %1384 = vmatpush3.msra.mxu0 %v344_v10  ;;  %1429 = vmatprep.subr.mxu1 %v867_v36 }
  0x73   : > { %1385 = vmatprep.subr.mxu0 %v343_v11  ;;  %1430 = vmatpush3.msra.mxu1 %v867_v36 }
  0x74   : > { %1386 = vmatpush3.msra.mxu0 %v343_v11  ;;  %1431 = vmatprep.subr.mxu1 %v866_v37 }
  0x75   : > { %1387 = vmatprep.subr.mxu0 %v342_v12  ;;  %1432 = vmatpush3.msra.mxu1 %v866_v37 }
  0x76   : > { %1388 = vmatpush3.msra.mxu0 %v342_v12  ;;  %1433 = vmatprep.subr.mxu1 %v865_v38  ;;  %v2050_v12 = vrot.slane %v354_v51, %v738_v63 }
  0x77   : > { %1389 = vmatprep.subr.mxu0 %v341_v13  ;;  %1434 = vmatpush3.msra.mxu1 %v865_v38 }
  0x78   : > { %1390 = vmatpush3.msra.mxu0 %v341_v13  ;;  %1435 = vmatprep.subr.mxu1 %v864_v39 }
  0x79   : > { %1391 = vmatprep.subr.mxu0 %v340_v14  ;;  %1436 = vmatpush3.msra.mxu1 %v864_v39 }
  0x7a   : > { %1392 = vmatpush3.msra.mxu0 %v340_v14  ;;  %1437 = vmatprep.subr.mxu1 %v863_v40 }
  0x7b   : > { %1393 = vmatprep.subr.mxu0 %v339_v15  ;;  %1438 = vmatpush3.msra.mxu1 %v863_v40 }
  0x7c   : > { %1394 = vmatpush3.msra.mxu0 %v339_v15  ;;  %1439 = vmatprep.subr.mxu1 %v862_v41 }
  0x7d   : > { %1395 = vmatprep.subr.mxu0 %v338_v16  ;;  %1440 = vmatpush3.msra.mxu1 %v862_v41 }
  0x7e   : > { %1396 = vmatpush3.msra.mxu0 %v338_v16  ;;  %1441 = vmatprep.subr.mxu1 %v861_v42 }
  0x7f   : > { %1398 = vmatmul.mubr.f32.vlgmr.msra.gmra.mxu0 %v323_v17  ;;  %1442 = vmatpush3.msra.mxu1 %v861_v42 }
  0x80   : > { %1400 = vmatprep.mubr.f32.mxu0 %v324_v18  ;;  %1443 = vmatprep.subr.mxu1 %v860_v43 }
  0x81   : > { %1444 = vmatpush3.msra.mxu1 %v860_v43 }
  0x82   : > { %1445 = vmatprep.subr.mxu1 %v859_v44 }
  0x83   : > { %1401 = vmatmul.mubr.f32.gmra.mxu0 %v325_v19  ;;  %1446 = vmatpush3.msra.mxu1 %v859_v44 }
  0x84   : > { %1403 = vmatprep.mubr.f32.mxu0 %v326_v20  ;;  %1447 = vmatprep.subr.mxu1 %v858_v45  ;;  %v2062_v20 = vrot.slane %v354_v51, %v774_v5 }
  0x85   : > { %1448 = vmatpush3.msra.mxu1 %v858_v45 }
  0x86   : > { %1449 = vmatprep.subr.mxu1 %v857_v46 }
  0x87   : > { %1404 = vmatmul.mubr.f32.gmra.mxu0 %v327_v21  ;;  %1450 = vmatpush3.msra.mxu1 %v857_v46 }
  0x88   : > { %1406 = vmatprep.mubr.f32.mxu0 %v328_v22  ;;  %1451 = vmatprep.subr.mxu1 %v856_v47 }
  0x89   : > { %1452 = vmatpush3.msra.mxu1 %v856_v47 }
  0x8b   : > { %1407 = vmatmul.mubr.f32.gmra.mxu0 %v329_v23 }
  0x8c   : > { %1409 = vmatprep.mubr.f32.mxu0 %v330_v24 }
  0x8f   : > { %1410 = vmatmul.mubr.f32.gmra.mxu0 %v331_v25 }
  0x90   : > { %1412 = vmatprep.mubr.f32.mxu0 %v332_v26 }
  0x93   : > { %1413 = vmatmul.mubr.f32.gmra.mxu0 %v333_v27 }
  0x94   : > { %1415 = vmatprep.mubr.f32.mxu0 %v334_v28 }
  0x97   : > { %1416 = vmatmul.mubr.f32.gmra.mxu0 %v335_v29 }
  0x98   : > { %1418 = vmatprep.mubr.f32.mxu0 %v336_v30 }
  0x9b   : > { %1419 = vmatmul.mubr.f32.gmra.mxu0 %v337_v31 }
 0x13f   : > { %v1399_v55 = vpop.f32.mrf.mxu0 }
 0x140   : > { %v2019_v56 = vadd.f32 %v1399_v55, %v2016_v52 }
 0x141   : > { %v425_v58 = vpop.f32.mrf.mxu0 }
 0x142   : > { %v2024_v59 = vand.u32 2147483647, %v2019_v56  ;;  %v2029_v61 = vadd.f32 %v425_v58, %v2016_v52  ;;  %v505_v62 = vmul.f32 0.0029028396, %v2019_v56 }
 0x143   : > { %v1402_v0 = vpop.f32.mrf.mxu0 }
 0x144   : > { %v685_v1 = vmul.f32 %v2021_v57, %v2024_v59  ;;  %v2035_v2 = vand.u32 2147483647, %v2029_v61  ;;  %v2038_v3 = vadd.f32 %v1402_v0, %v2016_v52  ;;  %v504_v4 = vmul.f32 0.0029028396, %v2029_v61 }
 0x145   : > { %v435_v6 = vpop.f32.mrf.mxu0  ;;  %v521_v7 = vadd.f32 0.0243559, %v505_v62 }
 0x146   : > { %v705_v8 = vadd.f32 %v2026_v60, %v685_v1  ;;  %v684_v9 = vmul.f32 %v2021_v57, %v2035_v2  ;;  %v2045_v10 = vand.u32 2147483647, %v2038_v3  ;;  %v2048_v11 = vadd.f32 %v435_v6, %v2016_v52 }
 0x147   : > { %v1405_v13 = vpop.f32.mrf.mxu0  ;;  %v520_v14 = vadd.f32 0.0243559, %v504_v4  ;;  %v537_v15 = vmul.f32 %v521_v7, %v2019_v56  ;;  %v2078_v33 = vmul.f32 0.0029028396, %v2038_v3 }
 0x148   : > { %v721_v16 = vmul.f32 %v705_v8, %v2024_v59  ;;  %v687_v17 = vmul.f32 %v2021_v57, %v2045_v10  ;;  %v2057_v18 = vand.u32 2147483647, %v2048_v11  ;;  %v2060_v19 = vadd.f32 %v1405_v13, %v2016_v52 }
 0x149   : > { %v445_v21 = vpop.f32.mrf.mxu0  ;;  %v536_v22 = vmul.f32 %v520_v14, %v2029_v61  ;;  %v704_v23 = vadd.f32 %v2026_v60, %v684_v9  ;;  %v553_v24 = vadd.f32 0.1302272, %v537_v15  ;;  %v506_v37 = vmul.f32 0.0029028396, %v2048_v11 }
 0x14a   : > { %v707_v25 = vadd.f32 %v2026_v60, %v687_v17  ;;  %v686_v26 = vmul.f32 %v2021_v57, %v2057_v18  ;;  %v2070_v27 = vand.u32 2147483647, %v2060_v19  ;;  %v2073_v28 = vadd.f32 %v445_v21, %v2016_v52 }
 0x14b   : > { %v1408_v29 = vpop.f32.mrf.mxu0  ;;  %v552_v30 = vadd.f32 0.1302272, %v536_v22  ;;  %v720_v31 = vmul.f32 %v704_v23, %v2035_v2  ;;  %v569_v32 = vmul.f32 %v553_v24, %v2019_v56  ;;  %v741_v36 = vadd.f32 %v2050_v12, %v721_v16 }
 0x14c   : > { %v689_v34 = vmul.f32 %v2021_v57, %v2070_v27  ;;  %v2083_v35 = vand.u32 2147483647, %v2073_v28  ;;  %v2088_v38 = vadd.f32 %v1408_v29, %v2016_v52  ;;  %v2093_v43 = vmul.f32 %v707_v25, %v2045_v10 }
 0x14d   : > { %v455_v39 = vpop.f32.mrf.mxu0  ;;  %v568_v40 = vmul.f32 %v552_v30, %v2029_v61  ;;  %v740_v41 = vadd.f32 %v2050_v12, %v720_v31  ;;  %v585_v42 = vadd.f32 0.41586363, %v569_v32  ;;  %v706_v44 = vadd.f32 %v2026_v60, %v686_v26 }
 0x14e   : > { %v688_v45 = vmul.f32 %v2021_v57, %v2083_v35  ;;  %v2099_v46 = vadd.f32 %v455_v39, %v2016_v52  ;;  %v2102_v47 = vand.u32 2147483647, %v2088_v38  ;;  %v709_v53 = vadd.f32 %v2026_v60, %v689_v34 }
 0x14f   : > { %v1411_v48 = vpop.f32.mrf.mxu0  ;;  %v584_v49 = vadd.f32 0.41586363, %v568_v40  ;;  %v756_v50 = vmul.f32 %v740_v41, %v2035_v2  ;;  %v601_v51 = vmul.f32 %v585_v42, %v2019_v56  ;;  %v722_v5 = vmul.f32 %v706_v44, %v2057_v18 }
 0x150   : > { %v708_v54 = vadd.f32 %v2026_v60, %v688_v45  ;;  %v2109_v55 = vand.u32 2147483647, %v2099_v46  ;;  %v2112_v58 = vadd.f32 %v1411_v48, %v2016_v52  ;;  %v691_v62 = vmul.f32 %v2021_v57, %v2102_v47 }
 0x151   : > { %v465_v63 = vpop.f32.mrf.mxu0  ;;  %v600_v0 = vmul.f32 %v584_v49, %v2029_v61  ;;  %v776_v1 = vadd.f32 %v2062_v20, %v756_v50  ;;  %v617_v4 = vadd.f32 0.5080497, %v601_v51  ;;  %v2140_v24 = vmul.f32 %v709_v53, %v2070_v27 }
 0x152   : > { %v690_v6 = vmul.f32 %v2021_v57, %v2109_v55  ;;  %v2122_v7 = vand.u32 2147483647, %v2112_v58  ;;  %v2125_v8 = vadd.f32 %v465_v63, %v2016_v52  ;;  %v711_v9 = vadd.f32 %v2026_v60, %v691_v62 }
 0x153   : > { %v1414_v13 = vpop.f32.mrf.mxu0  ;;  %v616_v14 = vadd.f32 0.5080497, %v600_v0  ;;  %v792_v15 = vmul.f32 %v776_v1, %v2035_v2  ;;  %v633_v16 = vmul.f32 %v617_v4, %v2019_v56  ;;  %v2143_v25 = vmul.f32 %v708_v54, %v2083_v35 }
 0x154   : > { %v710_v17 = vadd.f32 %v2026_v60, %v690_v6  ;;  %v693_v21 = vmul.f32 %v2021_v57, %v2122_v7  ;;  %v2134_v22 = vand.u32 2147483647, %v2125_v8  ;;  %v2137_v23 = vadd.f32 %v1414_v13, %v2016_v52 }
 0x155   : > { %v475_v2 = vpop.f32.mrf.mxu0  ;;  %v632_v56 = vmul.f32 %v616_v14, %v2029_v61  ;;  %v808_v26 = vadd.f32 1.0, %v792_v15  ;;  %v2147_v29 = vmul.f32 %v711_v9, %v2102_v47  ;;  %v2154_v32 = vadd.f32 -0.0012423594, %v633_v16 }
 0x156   : > { %v692_v30 = vmul.f32 %v2021_v57, %v2134_v22  ;;  %v2152_v31 = vand.u32 2147483647, %v2137_v23  ;;  %v2157_v34 = vmul.f32 %v710_v17, %v2109_v55  ;;  %v2160_v39 = vadd.f32 %v475_v2, %v2016_v52 }
 0x157   : > { %v1417_v40 = vpop.f32.mrf.mxu0  ;;  %1574 = vrcp.f32 %v808_v26  ;;  %v757_v61 = vmul.f32 %v741_v36, %v2024_v59  ;;  %v713_v41 = vadd.f32 %v2026_v60, %v693_v21  ;;  %v648_v45 = vadd.f32 -0.0012423594, %v632_v56 }
 0x158   : > { %v695_v42 = vmul.f32 %v2021_v57, %v2152_v31  ;;  %v2167_v44 = vadd.f32 %v1417_v40, %v2016_v52  ;;  %v2170_v48 = vand.u32 2147483647, %v2160_v39  ;;  %v522_v51 = vadd.f32 0.0243559, %v506_v37 }
 0x159   : > { %v485_v49 = vpop.f32.mrf.mxu0  ;;  %v777_v50 = vadd.f32 %v2062_v20, %v757_v61  ;;  %v742_v53 = vadd.f32 %v2050_v12, %v722_v5  ;;  %v712_v36 = vadd.f32 %v2026_v60, %v692_v30  ;;  %v2188_v6 = vmul.f32 %v713_v41, %v2122_v7 }
 0x15a   : > { %v715_v54 = vadd.f32 %v2026_v60, %v695_v42  ;;  %v2177_v62 = vand.u32 2147483647, %v2167_v44  ;;  %v2180_v63 = vadd.f32 %v485_v49, %v2016_v52  ;;  %v694_v0 = vmul.f32 %v2021_v57, %v2170_v48 }
 0x15b   : > { %v1420_v1 = vpop.f32.mrf.mxu0  ;;  %v793_v4 = vmul.f32 %v777_v50, %v2024_v59  ;;  %v538_v37 = vmul.f32 %v522_v51, %v2048_v11  ;;  %v758_v5 = vmul.f32 %v742_v53, %v2057_v18  ;;  %v2201_v2 = vmul.f32 %v712_v36, %v2134_v22 }
 0x15c   : > { %v697_v9 = vmul.f32 %v2021_v57, %v2177_v62  ;;  %v2193_v13 = vand.u32 2147483647, %v2180_v63  ;;  %v2196_v14 = vadd.f32 %v1420_v1, %v2016_v52  ;;  %v714_v15 = vadd.f32 %v2026_v60, %v694_v0 }
 0x15d   : > { %v495_v16 = vpop.f32.mrf.mxu0  ;;  %v809_v59 = vadd.f32 1.0, %v793_v4  ;;  %v554_v17 = vadd.f32 0.1302272, %v538_v37  ;;  %v778_v21 = vadd.f32 %v2062_v20, %v758_v5  ;;  %v2212_v40 = vmul.f32 %v715_v54, %v2152_v31 }
 0x15e   : > { %v696_v56 = vmul.f32 %v2021_v57, %v2193_v13  ;;  %v2206_v26 = vand.u32 2147483647, %v2196_v14  ;;  %v2209_v30 = vadd.f32 %v495_v16, %v2016_v52  ;;  %v2217_v42 = vmul.f32 %v714_v15, %v2170_v48 }
 0x15f   : > { %1576 = vrcp.f32 %v809_v59  ;;  %v570_v61 = vmul.f32 %v554_v17, %v2048_v11  ;;  %v794_v41 = vmul.f32 %v778_v21, %v2057_v18  ;;  %v2220_v49 = vadd.f32 %v2026_v60, %v697_v9 }
 0x160   : > { %v699_v50 = vmul.f32 %v2021_v57, %v2206_v26  ;;  %v2225_v52 = vand.u32 2147483647, %v2209_v30  ;;  %v523_v36 = vadd.f32 0.0243559, %v2078_v33  ;;  %v743_v54 = vadd.f32 %v2050_v12, %v2093_v43 }
 0x161   : > { %v586_v51 = vadd.f32 0.41586363, %v570_v61  ;;  %v810_v53 = vadd.f32 1.0, %v794_v41  ;;  %v2231_v18 = vadd.f32 %v2026_v60, %v696_v56  ;;  %v508_v4 = vmul.f32 0.0029028396, %v2073_v28 }
 0x162   : > { %v719_v0 = vadd.f32 %v2026_v60, %v699_v50  ;;  %v698_v1 = vmul.f32 %v2021_v57, %v2225_v52  ;;  %v539_v5 = vmul.f32 %v523_v36, %v2038_v3  ;;  %v759_v33 = vmul.f32 %v743_v54, %v2045_v10 }
 0x163   : > { %v602_v37 = vmul.f32 %v586_v51, %v2048_v11  ;;  %1578 = vrcp.f32 %v810_v53  ;;  %v524_v16 = vadd.f32 0.0243559, %v508_v4  ;;  %v744_v59 = vadd.f32 %v2050_v12, %v2143_v25 }
 0x164   : > { %v1575_v9 = vpop.eup %1574  ;;  %v2241_v43 = vmul.f32 %v719_v0, %v2206_v26  ;;  %v718_v15 = vadd.f32 %v2026_v60, %v698_v1  ;;  %v555_v21 = vadd.f32 0.1302272, %v539_v5  ;;  %v779_v56 = vadd.f32 %v2062_v20, %v759_v33 }
 0x165   : > { %v840_v57 = vmul.f32 %v1575_v9, %v648_v45  ;;  %v618_v17 = vadd.f32 0.5080497, %v602_v37  ;;  %v540_v41 = vmul.f32 %v524_v16, %v2073_v28  ;;  %v760_v50 = vmul.f32 %v744_v59, %v2083_v35 }
 0x166   : > { %v2248_v61 = vmul.f32 %v718_v15, %v2225_v52  ;;  %v509_v51 = vmul.f32 0.0029028396, %v2060_v19  ;;  %v571_v53 = vmul.f32 %v555_v21, %v2038_v3  ;;  %v795_v25 = vmul.f32 %v779_v56, %v2045_v10 }
 0x167   : > { %1453 = vmatprep.mubr.f32.mxu1 %v840_v57  ;;  %v634_v60 = vmul.f32 %v618_v17, %v2048_v11  ;;  %v745_v45 = vadd.f32 %v2050_v12, %v2140_v24  ;;  %v556_v36 = vadd.f32 0.1302272, %v540_v41  ;;  %v780_v54 = vadd.f32 %v2062_v20, %v760_v50 }
 0x168   : > { %v525_v0 = vadd.f32 0.0243559, %v509_v51  ;;  %v510_v1 = vmul.f32 0.0029028396, %v2099_v46  ;;  %v587_v37 = vadd.f32 0.41586363, %v571_v53  ;;  %v746_v59 = vadd.f32 %v2050_v12, %v2157_v34 }
 0x169   : > { %v650_v4 = vadd.f32 -0.0012423594, %v634_v60  ;;  %v811_v5 = vadd.f32 1.0, %v795_v25  ;;  %v761_v33 = vmul.f32 %v745_v45, %v2070_v27  ;;  %v572_v11 = vmul.f32 %v556_v36, %v2073_v28 }
 0x16a   : > { %v796_v9 = vmul.f32 %v780_v54, %v2083_v35  ;;  %v541_v10 = vmul.f32 %v525_v0, %v2060_v19  ;;  %v526_v15 = vadd.f32 0.0243559, %v510_v1  ;;  %v603_v24 = vmul.f32 %v587_v37, %v2038_v3 }
 0x16b   : > { %1580 = vrcp.f32 %v811_v5  ;;  %v781_v16 = vadd.f32 %v2062_v20, %v761_v33  ;;  %v588_v17 = vadd.f32 0.41586363, %v572_v11  ;;  %v762_v60 = vmul.f32 %v746_v59, %v2109_v55 }
 0x16c   : > { %v1577_v57 = vpop.eup %1576  ;;  %v812_v21 = vadd.f32 1.0, %v796_v9  ;;  %v557_v56 = vadd.f32 0.1302272, %v541_v10  ;;  %v542_v41 = vmul.f32 %v526_v15, %v2099_v46  ;;  %v619_v35 = vadd.f32 0.5080497, %v603_v24 }
 0x16d   : > { %v841_v50 = vmul.f32 %v1577_v57, %v2154_v32  ;;  %v797_v51 = vmul.f32 %v781_v16, %v2070_v27  ;;  %v604_v53 = vmul.f32 %v588_v17, %v2073_v28  ;;  %v782_v54 = vadd.f32 %v2062_v20, %v762_v60 }
 0x16e   : > { %1582 = vrcp.f32 %v812_v21  ;;  %v573_v25 = vmul.f32 %v557_v56, %v2060_v19  ;;  %v558_v45 = vadd.f32 0.1302272, %v542_v41  ;;  %v635_v34 = vmul.f32 %v619_v35, %v2038_v3 }
 0x16f   : > { %1454 = vmatmul.mubr.f32.vlgmr.msra.gmra.mxu1 %v841_v50  ;;  %v813_v36 = vadd.f32 1.0, %v797_v51  ;;  %v511_v0 = vmul.f32 0.0029028396, %v2088_v38  ;;  %v620_v1 = vadd.f32 0.5080497, %v604_v53  ;;  %v747_v5 = vadd.f32 %v2050_v12, %v2147_v29 }
 0x170   : > { %v1579_v32 = vpop.eup %1578  ;;  %v589_v37 = vadd.f32 0.41586363, %v573_v25  ;;  %v574_v27 = vmul.f32 %v558_v45, %v2099_v46  ;;  %v651_v11 = vadd.f32 -0.0012423594, %v635_v34  ;;  %v798_v9 = vmul.f32 %v782_v54, %v2109_v55 }
 0x171   : > { %v842_v33 = vmul.f32 %v1579_v32, %v650_v4  ;;  %1584 = vrcp.f32 %v813_v36  ;;  %v636_v3 = vmul.f32 %v620_v1, %v2073_v28  ;;  %v527_v24 = vadd.f32 0.0243559, %v511_v0 }
 0x172   : > { %v605_v10 = vmul.f32 %v589_v37, %v2060_v19  ;;  %v590_v15 = vadd.f32 0.41586363, %v574_v27  ;;  %v814_v16 = vadd.f32 1.0, %v798_v9  ;;  %v763_v59 = vmul.f32 %v747_v5, %v2102_v47 }
 0x173   : > { %1456 = vmatprep.mubr.f32.mxu1 %v842_v33  ;;  %v512_v57 = vmul.f32 0.0029028396, %v2125_v8  ;;  %v748_v29 = vadd.f32 %v2050_v12, %v2201_v2  ;;  %v652_v4 = vadd.f32 -0.0012423594, %v636_v3  ;;  %v543_v55 = vmul.f32 %v527_v24, %v2088_v38 }
 0x174   : > { %v621_v17 = vadd.f32 0.5080497, %v605_v10  ;;  %v606_v21 = vmul.f32 %v590_v15, %v2099_v46  ;;  %1586 = vrcp.f32 %v814_v16  ;;  %v783_v28 = vadd.f32 %v2062_v20, %v763_v59 }
 0x175   : > { %v528_v56 = vadd.f32 0.0243559, %v512_v57  ;;  %v764_v41 = vmul.f32 %v748_v29, %v2134_v22  ;;  %v559_v51 = vadd.f32 0.1302272, %v543_v55  ;;  %v513_v60 = vmul.f32 0.0029028396, %v2112_v58 }
 0x176   : > { %v637_v50 = vmul.f32 %v621_v17, %v2060_v19  ;;  %v622_v35 = vadd.f32 0.5080497, %v606_v21  ;;  %v799_v2 = vmul.f32 %v783_v28, %v2102_v47  ;;  %v749_v45 = vadd.f32 %v2050_v12, %v2188_v6 }
 0x177   : > { %v544_v53 = vmul.f32 %v528_v56, %v2125_v8  ;;  %v784_v25 = vadd.f32 %v2062_v20, %v764_v41  ;;  %v575_v0 = vmul.f32 %v559_v51, %v2088_v38  ;;  %v529_v19 = vadd.f32 0.0243559, %v513_v60 }
 0x178   : > { %v1581_v34 = vpop.eup %1580  ;;  %v653_v36 = vadd.f32 -0.0012423594, %v637_v50  ;;  %v638_v54 = vmul.f32 %v622_v35, %v2099_v46  ;;  %v815_v1 = vadd.f32 1.0, %v799_v2  ;;  %v765_v9 = vmul.f32 %v749_v45, %v2122_v7 }
 0x179   : > { %v843_v32 = vmul.f32 %v1581_v34, %v651_v11  ;;  %v560_v37 = vadd.f32 0.1302272, %v544_v53  ;;  %v800_v27 = vmul.f32 %v784_v25, %v2134_v22  ;;  %v591_v5 = vadd.f32 0.41586363, %v575_v0 }
 0x17a   : > { %v654_v47 = vadd.f32 -0.0012423594, %v638_v54  ;;  %v545_v33 = vmul.f32 %v529_v19, %v2112_v58  ;;  %1588 = vrcp.f32 %v815_v1  ;;  %v514_v10 = vmul.f32 0.0029028396, %v2160_v39 }
 0x17b   : > { %v1583_v3 = vpop.eup %1582  ;;  %1457 = vmatmul.mubr.f32.gmra.mxu1 %v843_v32  ;;  %v576_v6 = vmul.f32 %v560_v37, %v2125_v8  ;;  %v816_v46 = vadd.f32 1.0, %v800_v27  ;;  %v607_v11 = vmul.f32 %v591_v5, %v2088_v38  ;;  %v785_v22 = vadd.f32 %v2062_v20, %v765_v9 }
 0x17c   : > { %v844_v15 = vmul.f32 %v1583_v3, %v652_v4  ;;  %v561_v24 = vadd.f32 0.1302272, %v545_v33  ;;  %v530_v59 = vadd.f32 0.0243559, %v514_v10  ;;  %v750_v57 = vadd.f32 %v2050_v12, %v2217_v42 }
 0x17d   : > { %v592_v16 = vadd.f32 0.41586363, %v576_v6  ;;  %1590 = vrcp.f32 %v816_v46  ;;  %v623_v17 = vadd.f32 0.5080497, %v607_v11  ;;  %v801_v55 = vmul.f32 %v785_v22, %v2122_v7 }
 0x17e   : > { %v1585_v29 = vpop.eup %1584  ;;  %1459 = vmatprep.mubr.f32.mxu1 %v844_v15  ;;  %v577_v21 = vmul.f32 %v561_v24, %v2112_v58  ;;  %v515_v4 = vmul.f32 0.0029028396, %v2137_v23  ;;  %v546_v41 = vmul.f32 %v530_v59, %v2160_v39  ;;  %v766_v50 = vmul.f32 %v750_v57, %v2170_v48 }
 0x17f   : > { %v845_v28 = vmul.f32 %v1585_v29, %v653_v36  ;;  %v608_v56 = vmul.f32 %v592_v16, %v2125_v8  ;;  %v732_v35 = vmul.f32 %v2231_v18, %v2193_v13  ;;  %v817_v51 = vadd.f32 1.0, %v801_v55 }
 0x180   : > { %v593_v42 = vadd.f32 0.41586363, %v577_v21  ;;  %v531_v60 = vadd.f32 0.0243559, %v515_v4  ;;  %v562_v53 = vadd.f32 0.1302272, %v546_v41  ;;  %v786_v7 = vadd.f32 %v2062_v20, %v766_v50 }
 0x181   : > { %1460 = vmatmul.mubr.f32.gmra.mxu1 %v845_v28  ;;  %v624_v2 = vadd.f32 0.5080497, %v608_v56  ;;  %v751_v25 = vadd.f32 %v2050_v12, %v2212_v40  ;;  %v1587_v45 = vpop.eup %1586  ;;  %v639_v34 = vmul.f32 %v623_v17, %v2088_v38  ;;  %1592 = vrcp.f32 %v817_v51 }
 0x182   : > { %v609_v36 = vmul.f32 %v593_v42, %v2112_v58  ;;  %v547_v54 = vmul.f32 %v531_v60, %v2137_v23  ;;  %v733_v18 = vmul.f32 %v2220_v49, %v2177_v62  ;;  %v846_v0 = vmul.f32 %v1587_v45, %v654_v47 }
 0x183   : > { %v578_v19 = vmul.f32 %v562_v53, %v2160_v39  ;;  %v802_v32 = vmul.f32 %v786_v7, %v2170_v48  ;;  %v640_v1 = vmul.f32 %v624_v2, %v2125_v8  ;;  %v767_v40 = vmul.f32 %v751_v25, %v2152_v31 }
 0x184   : > { %v563_v37 = vadd.f32 0.1302272, %v547_v54  ;;  %v516_v38 = vmul.f32 0.0029028396, %v2180_v63  ;;  %1462 = vmatprep.mubr.f32.mxu1 %v846_v0  ;;  %v625_v27 = vadd.f32 0.5080497, %v609_v36  ;;  %v752_v9 = vadd.f32 %v2050_v12, %v732_v35 }
 0x185   : > { %v594_v5 = vadd.f32 0.41586363, %v578_v19  ;;  %v818_v33 = vadd.f32 1.0, %v802_v32  ;;  %v655_v3 = vadd.f32 -0.0012423594, %v639_v34  ;;  %v787_v47 = vadd.f32 %v2062_v20, %v767_v40 }
 0x186   : > { %v579_v49 = vmul.f32 %v563_v37, %v2137_v23  ;;  %v532_v6 = vadd.f32 0.0243559, %v516_v38  ;;  %v768_v8 = vmul.f32 %v752_v9, %v2193_v13  ;;  %v517_v46 = vmul.f32 0.0029028396, %v2167_v44 }
 0x187   : > { %v610_v48 = vmul.f32 %v594_v5, %v2160_v39  ;;  %1594 = vrcp.f32 %v818_v33  ;;  %v1589_v10 = vpop.eup %1588  ;;  %v656_v15 = vadd.f32 -0.0012423594, %v640_v1  ;;  %v803_v24 = vmul.f32 %v787_v47, %v2152_v31 }
 0x188   : > { %v595_v11 = vadd.f32 0.41586363, %v579_v49  ;;  %v548_v22 = vmul.f32 %v532_v6, %v2180_v63  ;;  %v847_v16 = vmul.f32 %v1589_v10, %v655_v3  ;;  %v641_v59 = vmul.f32 %v625_v27, %v2112_v58 }
 0x189   : > { %v788_v57 = vadd.f32 %v2062_v20, %v768_v8  ;;  %v533_v29 = vadd.f32 0.0243559, %v517_v46  ;;  %v626_v21 = vadd.f32 0.5080497, %v610_v48  ;;  %v819_v55 = vadd.f32 1.0, %v803_v24 }
 0x18a   : > { %v1591_v17 = vpop.eup %1590  ;;  %v564_v4 = vadd.f32 0.1302272, %v548_v22  ;;  %v753_v28 = vadd.f32 %v2050_v12, %v733_v18  ;;  %1463 = vmatmul.mubr.f32.gmra.mxu1 %v847_v16  ;;  %v611_v50 = vmul.f32 %v595_v11, %v2137_v23  ;;  %v657_v42 = vadd.f32 -0.0012423594, %v641_v59 }
 0x18b   : > { %v848_v56 = vmul.f32 %v1591_v17, %v656_v15  ;;  %v804_v41 = vmul.f32 %v788_v57, %v2193_v13  ;;  %v549_v31 = vmul.f32 %v533_v29, %v2167_v44  ;;  %1596 = vrcp.f32 %v819_v55 }
 0x18c   : > { %v580_v58 = vmul.f32 %v564_v4, %v2180_v63  ;;  %v769_v35 = vmul.f32 %v753_v28, %v2177_v62  ;;  %v754_v2 = vadd.f32 %v2050_v12, %v2248_v61  ;;  %v642_v53 = vmul.f32 %v626_v21, %v2160_v39 }
 0x18d   : > { %1465 = vmatprep.mubr.f32.mxu1 %v848_v56  ;;  %v820_v51 = vadd.f32 1.0, %v804_v41  ;;  %v565_v60 = vadd.f32 0.1302272, %v549_v31  ;;  %v518_v25 = vmul.f32 0.0029028396, %v2209_v30  ;;  %v755_v27 = vadd.f32 %v2050_v12, %v2241_v43 }
 0x18e   : > { %v596_v7 = vadd.f32 0.41586363, %v580_v58  ;;  %v789_v13 = vadd.f32 %v2062_v20, %v769_v35  ;;  %v1593_v45 = vpop.eup %1592  ;;  %v770_v36 = vmul.f32 %v754_v2, %v2225_v52  ;;  %v519_v54 = vmul.f32 0.0029028396, %v2196_v14 }
 0x18f   : > { %1598 = vrcp.f32 %v820_v51  ;;  %v581_v34 = vmul.f32 %v565_v60, %v2167_v44  ;;  %v849_v18 = vmul.f32 %v1593_v45, %v657_v42  ;;  %v627_v0 = vadd.f32 0.5080497, %v611_v50 }
 0x190   : > { %v612_v19 = vmul.f32 %v596_v7, %v2180_v63  ;;  %v805_v61 = vmul.f32 %v789_v13, %v2177_v62  ;;  %v534_v32 = vadd.f32 0.0243559, %v518_v25  ;;  %v790_v1 = vadd.f32 %v2062_v20, %v770_v36 }
 0x191   : > { %v597_v39 = vadd.f32 0.41586363, %v581_v34  ;;  %v535_v37 = vadd.f32 0.0243559, %v519_v54  ;;  %1466 = vmatmul.mubr.f32.gmra.mxu1 %v849_v18  ;;  %v658_v40 = vadd.f32 -0.0012423594, %v642_v53  ;;  %v643_v62 = vmul.f32 %v627_v0, %v2137_v23 }
 0x192   : > { %v821_v38 = vadd.f32 1.0, %v805_v61  ;;  %v628_v5 = vadd.f32 0.5080497, %v612_v19  ;;  %v550_v33 = vmul.f32 %v534_v32, %v2209_v30  ;;  %v806_v9 = vmul.f32 %v790_v1, %v2225_v52 }
 0x193   : > { %v551_v3 = vmul.f32 %v535_v37, %v2196_v14  ;;  %v613_v47 = vmul.f32 %v597_v39, %v2167_v44  ;;  %v771_v6 = vmul.f32 %v755_v27, %v2206_v26  ;;  %v659_v15 = vadd.f32 -0.0012423594, %v643_v62 }
 0x194   : > { %v1595_v49 = vpop.eup %1594  ;;  %1600 = vrcp.f32 %v821_v38  ;;  %v566_v8 = vadd.f32 0.1302272, %v550_v33  ;;  %v822_v46 = vadd.f32 1.0, %v806_v9  ;;  %v644_v43 = vmul.f32 %v628_v5, %v2180_v63 }
 0x195   : > { %v850_v48 = vmul.f32 %v1595_v49, %v658_v40  ;;  %v567_v10 = vadd.f32 0.1302272, %v551_v3  ;;  %v791_v12 = vadd.f32 %v2062_v20, %v771_v6  ;;  %v629_v11 = vadd.f32 0.5080497, %v613_v47 }
 0x196   : > { %v582_v52 = vmul.f32 %v566_v8, %v2209_v30  ;;  %1602 = vrcp.f32 %v822_v46  ;;  %v660_v17 = vadd.f32 -0.0012423594, %v644_v43 }
 0x197   : > { %1468 = vmatprep.mubr.f32.mxu1 %v850_v48  ;;  %v583_v23 = vmul.f32 %v567_v10, %v2196_v14  ;;  %v807_v24 = vmul.f32 %v791_v12, %v2206_v26  ;;  %v645_v63 = vmul.f32 %v629_v11, %v2167_v44 }
 0x198   : > { %v1597_v22 = vpop.eup %1596  ;;  %v598_v16 = vadd.f32 0.41586363, %v582_v52 }
 0x199   : > { %v851_v59 = vmul.f32 %v1597_v22, %v659_v15  ;;  %v599_v57 = vadd.f32 0.41586363, %v583_v23  ;;  %v823_v29 = vadd.f32 1.0, %v807_v24  ;;  %v661_v56 = vadd.f32 -0.0012423594, %v645_v63 }
 0x19a   : > { %v614_v20 = vmul.f32 %v598_v16, %v2209_v30 }
 0x19b   : > { %1469 = vmatmul.mubr.f32.gmra.mxu1 %v851_v59  ;;  %v615_v55 = vmul.f32 %v599_v57, %v2196_v14  ;;  %1604 = vrcp.f32 %v823_v29 }
 0x19c   : > { %v1599_v21 = vpop.eup %1598  ;;  %v630_v28 = vadd.f32 0.5080497, %v614_v20 }
 0x19d   : > { %v852_v4 = vmul.f32 %v1599_v21, %v660_v17  ;;  %v631_v41 = vadd.f32 0.5080497, %v615_v55 }
 0x19e   : > { %v646_v26 = vmul.f32 %v630_v28, %v2209_v30  ;;  %v1293_v30 = vld [vmem:[%s2457_s4] ss:$0 sm:$0xff] }
 0x19f   : > { %1471 = vmatprep.mubr.f32.mxu1 %v852_v4  ;;  %v647_v42 = vmul.f32 %v631_v41, %v2196_v14 }
 0x1a0   : > { %v662_v58 = vadd.f32 -0.0012423594, %v646_v26 }
 0x1a1   : > { %v1601_v31 = vpop.eup %1600  ;;  %v663_v44 = vadd.f32 -0.0012423594, %v647_v42 }
 0x1a2   : > { %v853_v50 = vmul.f32 %v1601_v31, %v661_v56 }
 0x1a3   : > { %v1603_v35 = vpop.eup %1602 }
 0x1a4   : > { %1472 = vmatmul.mubr.f32.gmra.mxu1 %v853_v50  ;;  %v854_v51 = vmul.f32 %v1603_v35, %v662_v58 }
 0x1a6   : > { %1474 = vmatprep.mubr.f32.mxu1 %v854_v51 }
 0x1a8   : > { %v1605_v60 = vpop.eup %1604 }
 0x1a9   : > { %v855_v2 = vmul.f32 %v1605_v60, %v663_v44 }
 0x1ab   : > { %1475 = vmatmul.mubr.f32.gmra.mxu1 %v855_v2 }
 0x22f   : > { %v1455_v53 = vpop.f32.mrf.mxu1 }
 0x230   : > { %v1116_v7 = vadd.f32 %v1455_v53, %v1293_v30 }
 0x231   : > { %v938_v13 = vpop.f32.mrf.mxu1 }
 0x232   : > { %1132 = vst [vmem:[%s2380_s30 + $0x8] sm:$0xff] %v1116_v7  ;;  %v1115_v14 = vadd.f32 %v1293_v30, %v938_v13 }
 0x234   : > { %1131 = vst [vmem:[%s2380_s30] sm:$0xff] %v1115_v14 }
 0x23b   : > { %v1458_v25 = vpop.f32.mrf.mxu1 }
 0x23c   : > { %v1118_v45 = vadd.f32 %v1458_v25, %v1293_v30 }
 0x23d   : > { %v948_v34 = vpop.f32.mrf.mxu1 }
 0x23e   : > { %1134 = vst [vmem:[%s2380_s30 + $0x18] sm:$0xff] %v1118_v45  ;;  %v1117_v36 = vadd.f32 %v1293_v30, %v948_v34 }
 0x240   : > { %1133 = vst [vmem:[%s2380_s30 + $0x10] sm:$0xff] %v1117_v36 }
 0x241   : > { %v1461_v54 = vpop.f32.mrf.mxu1 }
 0x242   : > { %v1120_v18 = vadd.f32 %v1461_v54, %v1293_v30 }
 0x243   : > { %v958_v0 = vpop.f32.mrf.mxu1 }
 0x244   : > { %1136 = vst [vmem:[%s2380_s30 + $0x28] sm:$0xff] %v1120_v18  ;;  %v1119_v19 = vadd.f32 %v1293_v30, %v958_v0 }
 0x246   : > { %1135 = vst [vmem:[%s2380_s30 + $0x20] sm:$0xff] %v1119_v19 }
 0x24a   : > { %v1464_v61 = vpop.f32.mrf.mxu1 }
 0x24b   : > { %v1122_v39 = vadd.f32 %v1464_v61, %v1293_v30 }
 0x24c   : > { %v968_v32 = vpop.f32.mrf.mxu1 }
 0x24d   : > { %1138 = vst [vmem:[%s2380_s30 + $0x38] sm:$0xff] %v1122_v39  ;;  %v1121_v1 = vadd.f32 %v1293_v30, %v968_v32 }
 0x24f   : > { %1137 = vst [vmem:[%s2380_s30 + $0x30] sm:$0xff] %v1121_v1 }
 0x251   : > { %v1467_v37 = vpop.f32.mrf.mxu1 }
 0x252   : > { %v1124_v40 = vadd.f32 %v1467_v37, %v1293_v30 }
 0x253   : > { %v978_v38 = vpop.f32.mrf.mxu1 }
 0x254   : > { %1140 = vst [vmem:[%s2380_s30 + $0x48] sm:$0xff] %v1124_v40  ;;  %v1123_v27 = vadd.f32 %v1293_v30, %v978_v38 }
 0x256   : > { %1139 = vst [vmem:[%s2380_s30 + $0x40] sm:$0xff] %v1123_v27 }
 0x25b   : > { %v1470_v5 = vpop.f32.mrf.mxu1 }
 0x25c   : > { %v1126_v33 = vadd.f32 %v1470_v5, %v1293_v30 }
 0x25d   : > { %v988_v9 = vpop.f32.mrf.mxu1 }
 0x25e   : > { %1142 = vst [vmem:[%s2380_s30 + $0x58] sm:$0xff] %v1126_v33  ;;  %v1125_v3 = vadd.f32 %v1293_v30, %v988_v9 }
 0x260   : > { %1141 = vst [vmem:[%s2380_s30 + $0x50] sm:$0xff] %v1125_v3 }
 0x264   : > { %v1473_v49 = vpop.f32.mrf.mxu1 }
 0x265   : > { %v1128_v62 = vadd.f32 %v1473_v49, %v1293_v30 }
 0x266   : > { %v998_v47 = vpop.f32.mrf.mxu1 }
 0x267   : > { %1144 = vst [vmem:[%s2380_s30 + $0x68] sm:$0xff] %v1128_v62  ;;  %v1127_v6 = vadd.f32 %v1293_v30, %v998_v47 }
 0x269   : > { %1143 = vst [vmem:[%s2380_s30 + $0x60] sm:$0xff] %v1127_v6 }
 0x26b   : > { %v1476_v48 = vpop.f32.mrf.mxu1 }
 0x26c   : > { %v1130_v8 = vadd.f32 %v1476_v48, %v1293_v30 }
 0x26d   : > { %v1008_v46 = vpop.f32.mrf.mxu1 }
 0x26e   : > { %1146 = vst [vmem:[%s2380_s30 + $0x78] sm:$0xff] %v1130_v8  ;;  %v1129_v10 = vadd.f32 %v1293_v30, %v1008_v46 }
 0x270   : > { %1145 = vst [vmem:[%s2380_s30 + $0x70] sm:$0xff] %v1129_v10 }
 0x271   : > { %1725 = shalt.err (!%p1722_p0)
}
 0x272   : > { %s1726_s1 = scalar_lea.hbm %s2401_s17, 2048  ;;  %s1730_s26 = scalar_lea.hbm %s2458_s5, 4096 }
 0x273   : > { %p1727_p3 = scmp.ne.s32.totalorder %s2401_s17, %s1726_s1  ;;  %p1731_p6 = scmp.lt.s32.totalorder %s2401_s17, %s2458_s5 }
 0x274   : > { %p1732_p12 = scmp.lt.s32.totalorder %s1730_s26, %s1726_s1 }
 0x275   : > { %p1728_p1 = pnand %p1727_p3, %p1947_p8 }
 0x276   : > { %p1733_p5 = por %p1732_p12, %p1731_p6 }
 0x277   : > { %p1729_p4 = pneg %p1728_p1 }
 0x279   : > { %p1734_p10 = pnand %p1733_p5, %p1729_p4 }
 0x27b   : > { %1737 = shalt.err (!%p1734_p10)
}
 0x27c   : > { %s1809_s14 = smov 128   ;;  %s1810_s27 = smov 8  }
 0x27d   : > { %1491 = dma.vmem_to_hbm [thread:$0]  (%p1947_p8), %s2403_s15, 2048, %s2401_s17, %s1148_s10, %s1809_s14, %s1809_s14, %s1810_s27  }
 0x27e PF: > { %s1176_s11 = sand.u32 1, %s1780_s18   ;;  %p2480_p2 = scmp.ne.s32.totalorder %s2469_s29, 0 }
 0x27f   : > { %p2481_p11 = scmp.ge.s32.totalorder %s1800_s23, 2  ;;  %s1177_s24 = scalar_lea.sflag [#allocation5], %s1176_s11 }
 0x281   : > { %p1508_p7 = pnand %p2481_p11, %p2480_p2 }
 0x283   : > { %p1509_p9 = pneg %p1508_p7 }
 0x285   : > { %1775 = dma.done.wait (%p1509_p9), %s1177_s24, 2048  }
 0x286   : > { %1777 = vsyncadd (%p1509_p9), %s1177_s24, 4294965248  ;;  %s23_s23 = sadd.s32 1, %s1800_s23   ;;  %s2482_s18 = smov %s1784_s19 }
 0x287   : > { %p20_p13 = scmp.ge.s32.totalorder %s23_s23, 4   ;;  %s2483_s19 = smov %s1788_s20 }
 0x288   : > { %s2484_s20 = smov %s1959_s25  ;;  %s2485_s21 = smov %s1796_s22 }
 0x289   : > { %s2486_s22 = smov %s2488_s8  ;;  %22 = sbr.rel (!%p20_p13) target bundleno = 10 (0xa), region = 112 }
 0x28e   :  { %1182 = vsyncpa [#allocation4], 1 }
 0x28f   :  { %1184 = vsyncpa [#allocation4 + $0x1], 1 }
 0x290   :  { %1185 = vsyncpa [#allocation7], 1 }
 0x291   :  { %1186 = vsyncpa [#allocation10], 1 }
 0x292   :  { %1187 = vsyncpa [#allocation5], 1 }
 0x293   :  { %1189 = vsyncpa [#allocation5 + $0x1], 1 }

</bundles_post_ra>
